<compile_context>
chip_gen: v6e
topology: v6e:2x2x1
jax: 0.10.0
libtpu: 0.0.40
codegen_flags: <defaults>
</compile_context>

<pallas_src>
import jax
import jax.numpy as jnp
from jax.experimental import pallas as pl
from jax.experimental.pallas import tpu as pltpu


# --------------------------------------------------------------------------
# Kernel body: elementwise max against an SMEM-resident scalar threshold.
# --------------------------------------------------------------------------
def _learn_relu_kernel(thr_ref, x_ref, o_ref):
    # thr_ref: (1,) float32 in SMEM (scalar-prefetched); x/o: (TR, L) in VMEM.
    thr = thr_ref[0].astype(o_ref.dtype)
    o_ref[...] = jnp.maximum(x_ref[...], thr)


# --------------------------------------------------------------------------
# Tiling helpers.
# --------------------------------------------------------------------------
def _tile_bytes_budget() -> int:
    """Per-block byte target, sized by chip generation (VMEM capacity)."""
    try:
        vmem = pltpu.get_tpu_info().vmem_capacity_bytes
    except Exception:  # CPU interpret mode / older runtimes
        vmem = 128 * 1024 * 1024
    if vmem <= 96 * 1024 * 1024:
        # v7x-class: 64 MiB VMEM per TC, ~3.2 TB/s HBM -> bigger blocks to
        # amortize the ~0.35 us per-grid-step overhead.
        return 6 * 1024 * 1024
    # v5e / v6e (128 MiB physical VMEM).
    return 4 * 1024 * 1024


def _choose_lanes(n: int) -> int:
    """Largest multiple-of-128 divisor of n (capped at 16K), or 0 if none."""
    best = 0
    cap = min(n, 16384)
    lanes = 128
    while lanes <= cap:
        if n % lanes == 0:
            best = lanes
        lanes += 128
    return best


def _run_slab(x2d: jax.Array, thr_f32: jax.Array) -> jax.Array:
    """Run the streaming max kernel over a lane-dense (rows, lanes) slab."""
    rows, lanes = x2d.shape
    dtype = x2d.dtype
    itemsize = jnp.dtype(dtype).itemsize
    sub = max(8, 32 // max(1, itemsize))          # packed sublane count

    tile_budget = _tile_bytes_budget()
    target_rows = max(sub, tile_budget // (lanes * itemsize))

    if rows <= target_rows:
        tr = rows                                 # single block == full dims
    else:
        nblocks = -(-rows // target_rows)         # ceil
        if nblocks % 2:
            nblocks += 1                          # even count -> both v7x TCs busy
        tr = -(-rows // nblocks)
        tr = max(sub, ((tr + sub - 1) // sub) * sub)
    grid_n = -(-rows // tr)

    tile_bytes = tr * lanes * itemsize
    # in + out, double-buffered = 4x tile; add headroom, cap under v7x VMEM.
    vmem_limit = min(32 * 1024 * 1024,
                     max(8 * 1024 * 1024, 4 * tile_bytes + 4 * 1024 * 1024))

    n = rows * lanes
    return pl.pallas_call(
        _learn_relu_kernel,
        out_shape=jax.ShapeDtypeStruct((rows, lanes), dtype),
        grid_spec=pltpu.PrefetchScalarGridSpec(
            num_scalar_prefetch=1,                # threshold -> SMEM, once
            grid=(grid_n,),
            in_specs=[pl.BlockSpec((tr, lanes), lambda i, thr: (i, 0))],
            out_specs=pl.BlockSpec((tr, lanes), lambda i, thr: (i, 0)),
        ),
        compiler_params=pltpu.CompilerParams(
            dimension_semantics=("parallel",),
            vmem_limit_bytes=int(vmem_limit),
        ),
        cost_estimate=pl.CostEstimate(
            flops=n, transcendentals=0, bytes_accessed=2 * n * itemsize + 4),
    )(thr_f32, x2d)


# --------------------------------------------------------------------------
# Forward implementation.
# --------------------------------------------------------------------------
def _learn_relu_impl(x: jax.Array, threshold) -> jax.Array:
    thr_arr = jnp.asarray(threshold)
    out_dtype = jnp.result_type(x.dtype, thr_arr.dtype)   # torch.maximum promotion
    n = x.size
    if n == 0:
        return x.astype(out_dtype)

    xw = x.astype(out_dtype)
    flat = xw.reshape(-1)                                  # free: contiguous reshape
    thr_smem = thr_arr.astype(jnp.float32).reshape(1)

    lanes = _choose_lanes(n)
    if lanes:
        out2d = _run_slab(flat.reshape(n // lanes, lanes), thr_smem)
        return out2d.reshape(x.shape)

    # Non-divisor shape: no full-tensor pad/slice.  Kernel handles the
    # 128-aligned bulk; a tiny tail (< lanes elems) goes through jnp.maximum.
    thr_cast = thr_arr.astype(out_dtype)
    lanes = 512 if n >= 512 else 128
    bulk = (n // lanes) * lanes
    if bulk == 0:
        return jnp.maximum(xw, thr_cast)                   # tensor smaller than a vreg row
    head = _run_slab(flat[:bulk].reshape(bulk // lanes, lanes), thr_smem).reshape(-1)
    tail = jnp.maximum(flat[bulk:], thr_cast)
    return jnp.concatenate([head, tail]).reshape(x.shape)


# --------------------------------------------------------------------------
# Public entry point with custom VJP so the threshold is trainable.
# --------------------------------------------------------------------------
@jax.custom_vjp
def learn_relu(x: jax.Array, threshold) -> jax.Array:
    """Elementwise max(x, threshold) with a scalar learnable threshold."""
    return _learn_relu_impl(x, threshold)


def _learn_relu_fwd(x, threshold):
    return _learn_relu_impl(x, threshold), (x, threshold)


def _learn_relu_bwd(res, g):
    # TODO(synk): backward is plain jnp (XLA fuses it); port to Pallas if it
    # ever shows up in profiles.
    x, threshold = res
    thr_arr = jnp.asarray(threshold)
    cmp_dtype = jnp.result_type(x.dtype, thr_arr.dtype)
    mask = x.astype(cmp_dtype) >= thr_arr.astype(cmp_dtype)
    dx = jnp.where(mask, g, 0).astype(x.dtype)
    dthr = jnp.sum(jnp.where(mask, 0, g)).astype(thr_arr.dtype).reshape(jnp.shape(thr_arr))
    return dx, dthr


learn_relu.defvjp(_learn_relu_fwd, _learn_relu_bwd)


# --------------------------------------------------------------------------
# Self-test.
# --------------------------------------------------------------------------
if __name__ == "__main__":
    key = jax.random.PRNGKey(0)

    # Parameter init exactly as in the module's __init__.
    threshold = jnp.array(0.0, dtype=jnp.float32)

    # Small NCHW input (batch=2, channels=4, 16x16 spatial).
    x = jax.random.normal(key, (2, 4, 16, 16), dtype=jnp.float32)

    out = jax.block_until_ready(learn_relu(x, threshold))

    ref = jnp.maximum(x, threshold)
    assert out.shape == x.shape and out.dtype == ref.dtype
    assert jnp.allclose(out, ref), "forward mismatch vs reference"

    # Gradient sanity check (custom VJP): dx = 1[x >= thr], dthr = sum over x < thr.
    g_x, g_thr = jax.grad(lambda a, t: jnp.sum(learn_relu(a, t)), argnums=(0, 1))(x, threshold)
    assert jnp.allclose(g_x, (x >= threshold).astype(x.dtype))
    assert jnp.allclose(g_thr, jnp.sum((x < threshold).astype(jnp.float32)))

    print("KERNEL_OK")
</pallas_src>

<mosaic_0001>
module attributes {stable_mosaic.version = 11 : i64} {
  func.func @_learn_relu_kernel(%arg0: i32, %arg1: memref<1xf32, #tpu.memory_space<smem>>, %arg2: memref<1x2048xf32, #tpu.memory_space<vmem>>, %arg3: memref<1x2048xf32, #tpu.memory_space<vmem>>) attributes {dimension_semantics = [#tpu.dimension_semantics<parallel>], iteration_bounds = array<i64: 1>, scalar_prefetch = 1 : i64, scratch_operands = 0 : i64, tpu.core_type = #tpu.core_type<tc>, window_params = [{transform_indices = @transform_0, window_bounds = array<i64: 1, 2048>}, {transform_indices = @transform_1, window_bounds = array<i64: 1, 2048>}]} {
    %c0 = arith.constant 0 : index
    %0 = memref.load %arg1[%c0] : memref<1xf32, #tpu.memory_space<smem>>
    %c0_0 = arith.constant 0 : index
    %c0_1 = arith.constant 0 : index
    %1 = vector.load %arg2[%c0_0, %c0_1] : memref<1x2048xf32, #tpu.memory_space<vmem>>, vector<1x2048xf32>
    %2 = vector.broadcast %0 : f32 to vector<1x2048xf32>
    %3 = arith.maximumf %1, %2 : vector<1x2048xf32>
    %c0_2 = arith.constant 0 : index
    %c0_3 = arith.constant 0 : index
    %4 = vector.load %arg3[%c0_2, %c0_3] : memref<1x2048xf32, #tpu.memory_space<vmem>>, vector<1x2048xf32>
    tpu.vector_store %arg3[%c0_2, %c0_3], %3 {strides = array<i32>} : memref<1x2048xf32, #tpu.memory_space<vmem>>, vector<1x2048xf32>,
    return
  }
  func.func @transform_0(%arg0: i32, %arg1: memref<1xf32, #tpu.memory_space<smem>>) -> (i32, i32) {
    %c0_i32 = arith.constant 0 : i32
    %c0_i32_0 = arith.constant 0 : i32
    return %arg0, %c0_i32 : i32, i32
  }
  func.func @transform_1(%arg0: i32, %arg1: memref<1xf32, #tpu.memory_space<smem>>) -> (i32, i32) {
    %c0_i32 = arith.constant 0 : i32
    %c0_i32_0 = arith.constant 0 : i32
    return %arg0, %c0_i32 : i32, i32
  }
}

</mosaic_0001>

<bundles_post_ra>
// kernel: tpu_custom_call.1
= control target key start
LH: loop header
LB: loop body
LE: loop exit
PB: predicated region body
PF: predicated region fallthrough
CT: control target
= control target key end

     0   :  { %8 = vsyncpa [#allocation5], 0  ;;  %s118_s0 = inlined_call_operand.<no memory space> [shape: f32[1], index: 0, kind: input, shape index: {}]   ;;  %s119_s1 = inlined_call_operand.hbm [shape: f32[1,2048], index: 1, kind: input, shape index: {}]   ;;  %s120_s2 = inlined_call_operand.hbm [shape: f32[1,2048], index: 2, kind: output, shape index: {}]  }
   0x1   :  { %9 = vsyncpa [#allocation6], 0  ;;  %s92_s9 = smov [#allocation4]  }
   0x2   :  { %s16_s10 = sshll.u32 %s92_s9, 4  ;;  %s17_s10 = int_to_ptr.vmem [resolvable:$true] %s16_s10 }
   0x3   :  { %s56_s11 = scalar_lea.vmem %s17_s10, 256  ;;  %p61_p1 = scmp.lt.s32.totalorder %s17_s10, %s17_s10 }
   0x4   :  { %p57_p0 = scmp.ne.s32.totalorder %s17_s10, %s56_s11  ;;  %p62_p2 = scmp.lt.s32.totalorder %s56_s11, %s56_s11 }
   0x6   :  { %p63_p3 = por %p62_p2, %p61_p1 }
   0x8   :  { %p64_p4 = pnand %p63_p3, %p57_p0 }
   0xa   :  { %67 = shalt.err (!%p64_p4)
}
   0xb   :  { %19 = dma.hbm_to_vmem [thread:$0]  %s119_s1, 256, %s17_s10, [#allocation5]  }
   0xc   :  { %88 = dma.done.wait [#allocation5], 256  }
   0xd   :  { %89 = vsyncadd [#allocation5], 4294967040  ;;  %v26_v0 = vstv %s118_s0  ;;  %s93_s16 = smov [#allocation7]   ;;  %v24_v1 = vld [vmem:[#allocation4] sm:$0xff]  ;;  %v25_v2 = vld [vmem:[#allocation4 + $0x8] sm:$0xff] }
   0xe   :  { %s37_s17 = sshll.u32 %s93_s16, 4  ;;  %v27_v3 = vmax.f32 %v24_v1, %v26_v0  ;;  %v28_v4 = vmax.f32 %v25_v2, %v26_v0  ;;  %s38_s17 = int_to_ptr.vmem [resolvable:$true] %s37_s17 }
   0xf   :  { %s68_s18 = scalar_lea.vmem %s38_s17, 256  ;;  %p73_p6 = scmp.lt.s32.totalorder %s38_s17, %s38_s17 }
  0x10   :  { %29 = vst [vmem:[#allocation7] sm:$0xff] %v27_v3  ;;  %30 = vst [vmem:[#allocation7 + $0x8] sm:$0xff] %v28_v4  ;;  %p69_p5 = scmp.ne.s32.totalorder %s38_s17, %s68_s18  ;;  %p74_p7 = scmp.lt.s32.totalorder %s68_s18, %s68_s18 }
  0x12   :  { %p75_p8 = por %p74_p7, %p73_p6 }
  0x14   :  { %p76_p9 = pnand %p75_p8, %p69_p5 }
  0x16   :  { %79 = shalt.err (!%p76_p9)
}
  0x17   :  { %40 = dma.vmem_to_hbm [thread:$0]  %s38_s17, 256, %s120_s2, [#allocation6]  }
  0x18   :  { %90 = dma.done.wait [#allocation6], 256  }
  0x19   :  { %91 = vsyncadd [#allocation6], 4294967040 }
  0x1a   :  { %44 = vsyncpa [#allocation5], 1 }
  0x1b   :  { %45 = vsyncpa [#allocation6], 1 }

</bundles_post_ra>
